<compile_context>
chip_gen: v7x
topology: tpu7x:2x2x1
jax: 0.10.0
libtpu: 0.0.40
codegen_flags: <defaults>
</compile_context>

<pallas_src>
import math

import jax
import jax.numpy as jnp
from jax.experimental import pallas as pl
from jax.experimental.pallas import tpu as pltpu

_LN_EPS = 1e-5
_INV_SQRT2 = 1.0 / math.sqrt(2.0)


def _round_up(x: int, m: int) -> int:
    return (x + m - 1) // m * m


def _vmem_capacity_bytes() -> int:
    """Best-effort per-core VMEM capacity; falls back to device_kind sniffing."""
    try:
        return int(pltpu.get_tpu_info().vmem_capacity_bytes)
    except Exception:
        pass
    try:
        kind = jax.devices()[0].device_kind.lower()
    except Exception:
        kind = ""
    if "v7" in kind or "7x" in kind:
        return 64 * 1024 * 1024
    return 128 * 1024 * 1024


def _resident_vmem_bytes(tm, th, dim, x_itemsize, out_itemsize, mxu_itemsize, use_acc):
    """Estimate of the double-buffered working set for one grid step."""
    b = 2 * tm * dim * x_itemsize            # x tile
    b += 2 * tm * dim * out_itemsize         # out tile
    b += 2 * dim * th * mxu_itemsize         # w1 hidden-slice
    b += 2 * th * dim * mxu_itemsize         # w2 hidden-slice
    b += 2 * (th + 3 * dim) * 4              # b1 / gamma / beta / b2
    b += tm * dim * mxu_itemsize             # xn scratch (cached LayerNorm output)
    if use_acc:
        b += tm * dim * 4                    # f32 accumulator scratch
    return b


def _layernorm_f32(x_ref, gamma_ref, beta_ref):
    x = x_ref[...].astype(jnp.float32)
    mean = jnp.mean(x, axis=-1, keepdims=True)
    xc = x - mean
    var = jnp.mean(xc * xc, axis=-1, keepdims=True)
    inv = jax.lax.rsqrt(var + _LN_EPS)
    return (xc * inv) * gamma_ref[...].astype(jnp.float32) + beta_ref[...].astype(jnp.float32)


def _gelu_f32(h):
    # Exact (erf) GELU, matching torch.nn.GELU() defaults.
    return 0.5 * h * (1.0 + jax.lax.erf(h * _INV_SQRT2))


def _ffn_kernel_out_acc(x_ref, gamma_ref, beta_ref, w1_ref, b1_ref, w2_ref, b2_ref,
                        o_ref, xn_ref):
    """float32 output: accumulate partial products directly into the resident out block."""
    k = pl.program_id(1)

    @pl.when(k == 0)
    def _init():
        xn_ref[...] = _layernorm_f32(x_ref, gamma_ref, beta_ref).astype(xn_ref.dtype)
        # Seed the resident output block with the output bias.
        o_ref[...] = jnp.broadcast_to(b2_ref[...].astype(o_ref.dtype), o_ref.shape)

    h = jnp.dot(xn_ref[...], w1_ref[...], preferred_element_type=jnp.float32)
    h = _gelu_f32(h + b1_ref[...].astype(jnp.float32))
    # Dropout(p=0.0) is identity.
    o_ref[...] += jnp.dot(h.astype(w2_ref.dtype), w2_ref[...],
                          preferred_element_type=jnp.float32)
    # TODO(synk): Dropout with p > 0 (training mode) would need pltpu.prng_*; p=0.0 here.


def _ffn_kernel_scratch_acc(x_ref, gamma_ref, beta_ref, w1_ref, b1_ref, w2_ref, b2_ref,
                            o_ref, xn_ref, acc_ref):
    """Low-precision output: accumulate in an f32 scratch, cast + store at the last k."""
    k = pl.program_id(1)

    @pl.when(k == 0)
    def _init():
        xn_ref[...] = _layernorm_f32(x_ref, gamma_ref, beta_ref).astype(xn_ref.dtype)
        acc_ref[...] = jnp.zeros_like(acc_ref)

    h = jnp.dot(xn_ref[...], w1_ref[...], preferred_element_type=jnp.float32)
    h = _gelu_f32(h + b1_ref[...].astype(jnp.float32))
    acc_ref[...] += jnp.dot(h.astype(w2_ref.dtype), w2_ref[...],
                            preferred_element_type=jnp.float32)

    @pl.when(k == pl.num_programs(1) - 1)
    def _finalize():
        o_ref[...] = (acc_ref[...] + b2_ref[...].astype(jnp.float32)).astype(o_ref.dtype)


def ffn_pallas(x, gamma, beta, w1, b1, w2, b2, *,
               tm: int | None = None,
               th: int | None = None,
               mxu_dtype=jnp.bfloat16,
               vmem_limit_bytes: int | None = None):
    """x: (..., dim). Returns same shape/dtype as x.

    gamma/beta: (1, dim); w1: (dim, hidden); b1: (1, hidden); w2: (hidden, dim); b2: (1, dim).
    Pass w1/w2 already in `mxu_dtype` to skip the per-call cast (recommended).
    """
    dim = x.shape[-1]
    hidden = w1.shape[1]
    orig_shape = x.shape
    out_dtype = x.dtype

    x2 = x.reshape(-1, dim)
    n = x2.shape[0]

    x_itemsize = x2.dtype.itemsize
    out_itemsize = jnp.dtype(out_dtype).itemsize
    mxu_itemsize = jnp.dtype(mxu_dtype).itemsize
    # Minimum sublane count for the second-to-last dim of x/out blocks (8/16/32 by dtype).
    min_sublane = 8 * max(1, 4 // x_itemsize)

    use_acc = out_dtype != jnp.float32

    # --- per-generation tile & VMEM-budget selection ---
    cap = _vmem_capacity_bytes()
    limit = int(vmem_limit_bytes) if vmem_limit_bytes is not None else int(cap * 0.85)
    big_vmem = cap >= 96 * 1024 * 1024          # v5e/v6e (128 MiB) vs v7x (64 MiB)

    tm_eff = tm if tm is not None else (512 if big_vmem else 384)
    th_req = th if th is not None else 1024

    tm_eff = max(min_sublane, min(tm_eff, _round_up(n, min_sublane)))
    tm_eff = _round_up(tm_eff, min_sublane)

    def _h_tiles(th_c):
        if hidden <= th_c:
            return hidden, hidden               # single full-hidden slice, no padding
        th_c = max(128, (th_c // 128) * 128)
        return th_c, _round_up(hidden, th_c)

    # Shrink TH first, then TM, until the double-buffered working set fits the budget.
    while True:
        th_eff, h_pad = _h_tiles(th_req)
        if _resident_vmem_bytes(tm_eff, th_eff, dim, x_itemsize, out_itemsize,
                                mxu_itemsize, use_acc) <= limit:
            break
        if th_eff > 256:
            th_req = max(256, th_req // 2)
        elif tm_eff > max(min_sublane, 128):
            tm_eff = max(min_sublane, _round_up(tm_eff // 2, min_sublane))
        else:
            break

    n_pad = _round_up(n, tm_eff)
    if n_pad != n:
        x2 = jnp.pad(x2, ((0, n_pad - n), (0, 0)))

    # Weights: cast only if the caller did not pre-cast (hoist the cast out of the hot path).
    w1c = w1 if w1.dtype == mxu_dtype else w1.astype(mxu_dtype)
    w2c = w2 if w2.dtype == mxu_dtype else w2.astype(mxu_dtype)
    b1p = b1
    if h_pad != hidden:
        # Zero-padded hidden units are exact no-ops: GELU(0 + 0) = 0, times zero w2 rows.
        w1c = jnp.pad(w1c, ((0, 0), (0, h_pad - hidden)))
        b1p = jnp.pad(b1, ((0, 0), (0, h_pad - hidden)))
        w2c = jnp.pad(w2c, ((0, h_pad - hidden), (0, 0)))

    grid = (n_pad // tm_eff, h_pad // th_eff)

    bytes_accessed = (
        n_pad * dim * (x_itemsize + out_itemsize)
        + 2 * dim * h_pad * mxu_itemsize * grid[0]   # weights re-streamed per token tile
        + (gamma.size + beta.size + b2.size + h_pad) * 4
    )
    cost = pl.CostEstimate(
        flops=4 * n_pad * dim * h_pad,               # two matmuls, 2 flops/MAC
        transcendentals=n_pad * h_pad,               # erf in GELU
        bytes_accessed=int(bytes_accessed),
    )

    scratch = [pltpu.VMEM((tm_eff, dim), mxu_dtype)]          # cached LayerNorm output (bf16)
    if use_acc:
        scratch.append(pltpu.VMEM((tm_eff, dim), jnp.float32))  # f32 accumulator
        kernel = _ffn_kernel_scratch_acc
    else:
        kernel = _ffn_kernel_out_acc                           # accumulate into o_ref directly

    out = pl.pallas_call(
        kernel,
        out_shape=jax.ShapeDtypeStruct((n_pad, dim), out_dtype),
        grid_spec=pltpu.PrefetchScalarGridSpec(
            num_scalar_prefetch=0,
            grid=grid,
            in_specs=[
                pl.BlockSpec((tm_eff, dim), lambda i, k: (i, 0)),   # x tile (resident over k)
                pl.BlockSpec((1, dim), lambda i, k: (0, 0)),        # gamma
                pl.BlockSpec((1, dim), lambda i, k: (0, 0)),        # beta
                pl.BlockSpec((dim, th_eff), lambda i, k: (0, k)),   # w1 hidden-slice
                pl.BlockSpec((1, th_eff), lambda i, k: (0, k)),     # b1 hidden-slice
                pl.BlockSpec((th_eff, dim), lambda i, k: (k, 0)),   # w2 hidden-slice
                pl.BlockSpec((1, dim), lambda i, k: (0, 0)),        # b2
            ],
            out_specs=pl.BlockSpec((tm_eff, dim), lambda i, k: (i, 0)),
            scratch_shapes=scratch,
        ),
        compiler_params=pltpu.CompilerParams(
            dimension_semantics=("parallel", "arbitrary"),
            vmem_limit_bytes=limit,
        ),
        cost_estimate=cost,
    )(x2, gamma, beta, w1c, b1p, w2c, b2)

    if n_pad != n:
        out = out[:n]
    return out.reshape(orig_shape)


def init_ffn_params(key, dim, hidden_dim, dtype=jnp.float32):
    """Init mimicking torch defaults (uniform +/- 1/sqrt(fan_in) for Linear, ones/zeros for LN)."""
    k1, k2, k3, k4 = jax.random.split(key, 4)
    gamma = jnp.ones((1, dim), dtype)
    beta = jnp.zeros((1, dim), dtype)
    bound1 = 1.0 / math.sqrt(dim)
    w1 = jax.random.uniform(k1, (dim, hidden_dim), dtype, -bound1, bound1)
    b1 = jax.random.uniform(k2, (1, hidden_dim), dtype, -bound1, bound1)
    bound2 = 1.0 / math.sqrt(hidden_dim)
    w2 = jax.random.uniform(k3, (hidden_dim, dim), dtype, -bound2, bound2)
    b2 = jax.random.uniform(k4, (1, dim), dtype, -bound2, bound2)
    return gamma, beta, w1, b1, w2, b2


def ffn_reference(x, gamma, beta, w1, b1, w2, b2):
    """Plain-JAX f32 reference for sanity checking."""
    mean = jnp.mean(x, axis=-1, keepdims=True)
    var = jnp.mean((x - mean) ** 2, axis=-1, keepdims=True)
    xn = (x - mean) * jax.lax.rsqrt(var + _LN_EPS) * gamma[0] + beta[0]
    h = xn @ w1 + b1[0]
    h = jax.nn.gelu(h, approximate=False)
    return h @ w2 + b2[0]


if __name__ == "__main__":
    key = jax.random.PRNGKey(0)
    kx, kp = jax.random.split(key)

    batch, seq, dim, hidden = 2, 8, 32, 64
    x = jax.random.normal(kx, (batch, seq, dim), jnp.float32)
    gamma, beta, w1, b1, w2, b2 = init_ffn_params(kp, dim, hidden)

    # One-time weight cast, hoisted out of the per-call path (review item).
    w1_bf16 = w1.astype(jnp.bfloat16)
    w2_bf16 = w2.astype(jnp.bfloat16)

    y_ref = ffn_reference(x, gamma, beta, w1, b1, w2, b2)

    # bf16 MXU path with f32 output -> accumulate-into-output kernel.
    y = jax.block_until_ready(ffn_pallas(x, gamma, beta, w1_bf16, b1, w2_bf16, b2))
    assert y.shape == x.shape and y.dtype == x.dtype
    assert jnp.allclose(y, y_ref, atol=2e-2, rtol=2e-2), "bf16 path mismatch vs reference"

    # f32 MXU path: tight tolerance (same tiling code path, no casts anywhere).
    y32 = jax.block_until_ready(
        ffn_pallas(x, gamma, beta, w1, b1, w2, b2, mxu_dtype=jnp.float32))
    assert jnp.allclose(y32, y_ref, atol=1e-4, rtol=1e-4), "f32 path mismatch vs reference"

    # bf16 input/output path -> exercises the f32 scratch-accumulator kernel and bf16 tiling.
    xb = x.astype(jnp.bfloat16)
    yb = jax.block_until_ready(ffn_pallas(xb, gamma, beta, w1_bf16, b1, w2_bf16, b2))
    assert yb.dtype == jnp.bfloat16
    assert jnp.allclose(yb.astype(jnp.float32), y_ref, atol=5e-2, rtol=5e-2), \
        "bf16-io path mismatch vs reference"

    print("KERNEL_OK")
</pallas_src>

<mosaic_0001>
module attributes {stable_mosaic.version = 11 : i64} {
  func.func @_ffn_kernel_out_acc(%arg0: i32, %arg1: i32, %arg2: memref<16x32xf32, #tpu.memory_space<vmem>>, %arg3: memref<1x32xf32, #tpu.memory_space<vmem>>, %arg4: memref<1x32xf32, #tpu.memory_space<vmem>>, %arg5: memref<32x64xbf16, #tpu.memory_space<vmem>>, %arg6: memref<1x64xf32, #tpu.memory_space<vmem>>, %arg7: memref<64x32xbf16, #tpu.memory_space<vmem>>, %arg8: memref<1x32xf32, #tpu.memory_space<vmem>>, %arg9: memref<16x32xf32, #tpu.memory_space<vmem>>, %arg10: memref<16x32xbf16, #tpu.memory_space<vmem>>) attributes {dimension_semantics = [#tpu.dimension_semantics<parallel>, #tpu.dimension_semantics<arbitrary>], iteration_bounds = array<i64: 1, 1>, scalar_prefetch = 0 : i64, scratch_operands = 1 : i64, tpu.core_type = #tpu.core_type<tc>, window_params = [{transform_indices = @transform_0, window_bounds = array<i64: 16, 32>}, {pipeline_mode = #tpu.pipeline_mode<synchronous>, transform_indices = @transform_1, window_bounds = array<i64: 1, 32>}, {pipeline_mode = #tpu.pipeline_mode<synchronous>, transform_indices = @transform_2, window_bounds = array<i64: 1, 32>}, {transform_indices = @transform_3, window_bounds = array<i64: 32, 64>}, {transform_indices = @transform_4, window_bounds = array<i64: 1, 64>}, {transform_indices = @transform_5, window_bounds = array<i64: 64, 32>}, {pipeline_mode = #tpu.pipeline_mode<synchronous>, transform_indices = @transform_6, window_bounds = array<i64: 1, 32>}, {transform_indices = @transform_7, window_bounds = array<i64: 16, 32>}]} {
    %c0_i32 = arith.constant 0 : i32
    %0 = arith.cmpi eq, %arg1, %c0_i32 : i32
    %1 = arith.extui %0 : i1 to i32
    %c0_i32_0 = arith.constant 0 : i32
    %2 = arith.cmpi ne, %1, %c0_i32_0 : i32
    scf.if %2 {
      %c0_16 = arith.constant 0 : index
      %c0_17 = arith.constant 0 : index
      %23 = vector.load %arg2[%c0_16, %c0_17] : memref<16x32xf32, #tpu.memory_space<vmem>>, vector<16x32xf32>
      %cst_18 = arith.constant dense<0.000000e+00> : vector<16xf32>
      %24 = vector.multi_reduction <add>, %23, %cst_18 [1] : vector<16x32xf32> to vector<16xf32>
      %25 = vector.shape_cast %24 : vector<16xf32> to vector<16x1xf32>
      %cst_19 = arith.constant 3.200000e+01 : f32
      %26 = vector.broadcast %cst_19 : f32 to vector<16x1xf32>
      %27 = arith.divf %25, %26 : vector<16x1xf32>
      %28 = vector.broadcast %27 : vector<16x1xf32> to vector<16x32xf32>
      %29 = arith.subf %23, %28 : vector<16x32xf32>
      %30 = arith.mulf %29, %29 : vector<16x32xf32>
      %cst_20 = arith.constant dense<0.000000e+00> : vector<16xf32>
      %31 = vector.multi_reduction <add>, %30, %cst_20 [1] : vector<16x32xf32> to vector<16xf32>
      %32 = vector.shape_cast %31 : vector<16xf32> to vector<16x1xf32>
      %cst_21 = arith.constant 3.200000e+01 : f32
      %33 = vector.broadcast %cst_21 : f32 to vector<16x1xf32>
      %34 = arith.divf %32, %33 : vector<16x1xf32>
      %cst_22 = arith.constant 9.99999974E-6 : f32
      %35 = vector.broadcast %cst_22 : f32 to vector<16x1xf32>
      %36 = arith.addf %34, %35 : vector<16x1xf32>
      %37 = math.rsqrt %36 : vector<16x1xf32>
      %38 = vector.broadcast %37 : vector<16x1xf32> to vector<16x32xf32>
      %39 = arith.mulf %29, %38 : vector<16x32xf32>
      %c0_23 = arith.constant 0 : index
      %c0_24 = arith.constant 0 : index
      %40 = vector.load %arg3[%c0_23, %c0_24] : memref<1x32xf32, #tpu.memory_space<vmem>>, vector<1x32xf32>
      %41 = vector.broadcast %40 : vector<1x32xf32> to vector<16x32xf32>
      %42 = arith.mulf %39, %41 : vector<16x32xf32>
      %c0_25 = arith.constant 0 : index
      %c0_26 = arith.constant 0 : index
      %43 = vector.load %arg4[%c0_25, %c0_26] : memref<1x32xf32, #tpu.memory_space<vmem>>, vector<1x32xf32>
      %44 = vector.broadcast %43 : vector<1x32xf32> to vector<16x32xf32>
      %45 = arith.addf %42, %44 : vector<16x32xf32>
      %46 = arith.truncf %45 : vector<16x32xf32> to vector<16x32xbf16>
      %c0_27 = arith.constant 0 : index
      %c0_28 = arith.constant 0 : index
      %47 = vector.load %arg10[%c0_27, %c0_28] : memref<16x32xbf16, #tpu.memory_space<vmem>>, vector<16x32xbf16>
      tpu.vector_store %arg10[%c0_27, %c0_28], %46 {strides = array<i32>} : memref<16x32xbf16, #tpu.memory_space<vmem>>, vector<16x32xbf16>,
      %c0_29 = arith.constant 0 : index
      %c0_30 = arith.constant 0 : index
      %48 = vector.load %arg8[%c0_29, %c0_30] : memref<1x32xf32, #tpu.memory_space<vmem>>, vector<1x32xf32>
      %49 = vector.shape_cast %48 : vector<1x32xf32> to vector<1x32xf32>
      %50 = vector.broadcast %49 : vector<1x32xf32> to vector<16x32xf32>
      %c0_31 = arith.constant 0 : index
      %c0_32 = arith.constant 0 : index
      %51 = vector.load %arg9[%c0_31, %c0_32] : memref<16x32xf32, #tpu.memory_space<vmem>>, vector<16x32xf32>
      tpu.vector_store %arg9[%c0_31, %c0_32], %50 {strides = array<i32>} : memref<16x32xf32, #tpu.memory_space<vmem>>, vector<16x32xf32>,
    } else {
    }
    %c0 = arith.constant 0 : index
    %c0_1 = arith.constant 0 : index
    %3 = vector.load %arg10[%c0, %c0_1] : memref<16x32xbf16, #tpu.memory_space<vmem>>, vector<16x32xbf16>
    %c0_2 = arith.constant 0 : index
    %c0_3 = arith.constant 0 : index
    %4 = vector.load %arg5[%c0_2, %c0_3] : memref<32x64xbf16, #tpu.memory_space<vmem>>, vector<32x64xbf16>
    %cst = arith.constant dense<0.000000e+00> : vector<16x64xf32>
    %5 = tpu.matmul %3, %4, %cst {dimension_numbers = #tpu.dot_dimension_numbers<[1], [0], [0], [1], [0, 0, 1, 1], [], []>} : vector<16x32xbf16>, vector<32x64xbf16>, vector<16x64xf32> -> vector<16x64xf32>
    %c0_4 = arith.constant 0 : index
    %c0_5 = arith.constant 0 : index
    %6 = vector.load %arg6[%c0_4, %c0_5] : memref<1x64xf32, #tpu.memory_space<vmem>>, vector<1x64xf32>
    %7 = vector.broadcast %6 : vector<1x64xf32> to vector<16x64xf32>
    %8 = arith.addf %5, %7 : vector<16x64xf32>
    %cst_6 = arith.constant 5.000000e-01 : f32
    %9 = vector.broadcast %cst_6 : f32 to vector<16x64xf32>
    %10 = arith.mulf %9, %8 : vector<16x64xf32>
    %cst_7 = arith.constant 0.707106769 : f32
    %11 = vector.broadcast %cst_7 : f32 to vector<16x64xf32>
    %12 = arith.mulf %8, %11 : vector<16x64xf32>
    %13 = math.erf %12 : vector<16x64xf32>
    %cst_8 = arith.constant 1.000000e+00 : f32
    %14 = vector.broadcast %cst_8 : f32 to vector<16x64xf32>
    %15 = arith.addf %14, %13 : vector<16x64xf32>
    %16 = arith.mulf %10, %15 : vector<16x64xf32>
    %c0_9 = arith.constant 0 : index
    %c0_10 = arith.constant 0 : index
    %17 = vector.load %arg9[%c0_9, %c0_10] : memref<16x32xf32, #tpu.memory_space<vmem>>, vector<16x32xf32>
    %18 = arith.truncf %16 : vector<16x64xf32> to vector<16x64xbf16>
    %c0_11 = arith.constant 0 : index
    %c0_12 = arith.constant 0 : index
    %19 = vector.load %arg7[%c0_11, %c0_12] : memref<64x32xbf16, #tpu.memory_space<vmem>>, vector<64x32xbf16>
    %cst_13 = arith.constant dense<0.000000e+00> : vector<16x32xf32>
    %20 = tpu.matmul %18, %19, %cst_13 {dimension_numbers = #tpu.dot_dimension_numbers<[1], [0], [0], [1], [0, 0, 1, 1], [], []>} : vector<16x64xbf16>, vector<64x32xbf16>, vector<16x32xf32> -> vector<16x32xf32>
    %21 = arith.addf %17, %20 : vector<16x32xf32>
    %c0_14 = arith.constant 0 : index
    %c0_15 = arith.constant 0 : index
    %22 = vector.load %arg9[%c0_14, %c0_15] : memref<16x32xf32, #tpu.memory_space<vmem>>, vector<16x32xf32>
    tpu.vector_store %arg9[%c0_14, %c0_15], %21 {strides = array<i32>} : memref<16x32xf32, #tpu.memory_space<vmem>>, vector<16x32xf32>,
    return
  }
  func.func @transform_0(%arg0: i32, %arg1: i32) -> (i32, i32) {
    %c0_i32 = arith.constant 0 : i32
    %c0_i32_0 = arith.constant 0 : i32
    return %arg0, %c0_i32 : i32, i32
  }
  func.func @transform_1(%arg0: i32, %arg1: i32) -> (i32, i32) {
    %c0_i32 = arith.constant 0 : i32
    %c0_i32_0 = arith.constant 0 : i32
    %c0_i32_1 = arith.constant 0 : i32
    return %c0_i32, %c0_i32_0 : i32, i32
  }
  func.func @transform_2(%arg0: i32, %arg1: i32) -> (i32, i32) {
    %c0_i32 = arith.constant 0 : i32
    %c0_i32_0 = arith.constant 0 : i32
    %c0_i32_1 = arith.constant 0 : i32
    return %c0_i32, %c0_i32_0 : i32, i32
  }
  func.func @transform_3(%arg0: i32, %arg1: i32) -> (i32, i32) {
    %c0_i32 = arith.constant 0 : i32
    %c0_i32_0 = arith.constant 0 : i32
    return %c0_i32, %arg1 : i32, i32
  }
  func.func @transform_4(%arg0: i32, %arg1: i32) -> (i32, i32) {
    %c0_i32 = arith.constant 0 : i32
    %c0_i32_0 = arith.constant 0 : i32
    return %c0_i32, %arg1 : i32, i32
  }
  func.func @transform_5(%arg0: i32, %arg1: i32) -> (i32, i32) {
    %c0_i32 = arith.constant 0 : i32
    %c0_i32_0 = arith.constant 0 : i32
    return %arg1, %c0_i32 : i32, i32
  }
  func.func @transform_6(%arg0: i32, %arg1: i32) -> (i32, i32) {
    %c0_i32 = arith.constant 0 : i32
    %c0_i32_0 = arith.constant 0 : i32
    %c0_i32_1 = arith.constant 0 : i32
    return %c0_i32, %c0_i32_0 : i32, i32
  }
  func.func @transform_7(%arg0: i32, %arg1: i32) -> (i32, i32) {
    %c0_i32 = arith.constant 0 : i32
    %c0_i32_0 = arith.constant 0 : i32
    return %arg0, %c0_i32 : i32, i32
  }
}

</mosaic_0001>

<bundles_post_ra>
// kernel: tpu_custom_call.1
= control target key start
LH: loop header
LB: loop body
LE: loop exit
PB: predicated region body
PF: predicated region fallthrough
CT: control target
= control target key end

     0   :  { %12 = vsyncpa [#allocation4], 0  ;;  %s795_s0 = inlined_call_operand.hbm [shape: f32[16,32], index: 0, kind: input, shape index: {}]   ;;  %s796_s1 = inlined_call_operand.hbm [shape: f32[1,32], index: 1, kind: input, shape index: {}]   ;;  %s797_s2 = inlined_call_operand.hbm [shape: f32[1,32], index: 2, kind: input, shape index: {}]   ;;  %s798_s3 = inlined_call_operand.hbm [shape: bf16[32,64], index: 3, kind: input, shape index: {}]   ;;  %s799_s4 = inlined_call_operand.hbm [shape: f32[1,64], index: 4, kind: input, shape index: {}]   ;;  %s800_s5 = inlined_call_operand.hbm [shape: bf16[64,32], index: 5, kind: input, shape index: {}]   ;;  %s801_s6 = inlined_call_operand.hbm [shape: f32[1,32], index: 6, kind: input, shape index: {}]   ;;  %s802_s7 = inlined_call_operand.hbm [shape: f32[16,32], index: 7, kind: output, shape index: {}]  }
   0x1   :  { %13 = vsyncpa [#allocation7], 0 }
   0x2   :  { %14 = vsyncpa [#allocation10], 0 }
   0x3   :  { %15 = vsyncpa [#allocation13], 0 }
   0x4   :  { %16 = vsyncpa [#allocation5], 0  ;;  %s615_s24 = smov [#allocation6]   ;;  %s616_s26 = smov [#allocation9]  }
   0x5   :  { %s35_s25 = sshll.u32 %s615_s24, 4  ;;  %s54_s27 = sshll.u32 %s616_s26, 4  ;;  %s36_s25 = int_to_ptr.vmem [resolvable:$true] %s35_s25  ;;  %s669_s27 = int_to_ptr.vmem [resolvable:$true] %s54_s27 }
   0x6   :  { %s429_s30 = scalar_lea.hbm %s796_s1, 16 }
   0x7   :  { %p430_p0 = scmp.ne.s32.totalorder %s796_s1, %s429_s30  ;;  %p433_p1 = scmp.lt.u32.totalorder %s429_s30, %s796_s1 }
   0x9   :  { %p435_p2 = pnand %p433_p1, %p430_p0 }
   0xb   :  { %438 = shalt.err (!%p435_p2)
}
   0xc   :  { %s439_s12 = scalar_lea.vmem %s36_s25, 16  ;;  %s443_s13 = scalar_lea.vmem %s36_s25, 32 }
   0xd   :  { %p440_p3 = scmp.ne.s32.totalorder %s36_s25, %s439_s12  ;;  %p444_p4 = scmp.lt.s32.totalorder %s36_s25, %s36_s25 }
   0xe   :  { %p445_p5 = scmp.lt.s32.totalorder %s443_s13, %s439_s12 }
  0x10   :  { %p446_p6 = por %p445_p5, %p444_p4 }
  0x12   :  { %p447_p7 = pnand %p446_p6, %p440_p3 }
  0x14   :  { %450 = shalt.err (!%p447_p7)
}
  0x15   :  { %38 = dma.hbm_to_vmem [thread:$0]  %s796_s1, 16, %s36_s25, [#allocation7]  }
  0x16   :  { %s451_s18 = scalar_lea.hbm %s798_s3, 256 }
  0x17   :  { %p452_p8 = scmp.ne.s32.totalorder %s798_s3, %s451_s18  ;;  %p455_p9 = scmp.lt.u32.totalorder %s451_s18, %s798_s3 }
  0x19   :  { %p457_p10 = pnand %p455_p9, %p452_p8 }
  0x1b   :  { %460 = shalt.err (!%p457_p10)
}
  0x1c   :  { %s461_s23 = scalar_lea.vmem %s669_s27, 256  ;;  %p466_p12 = scmp.lt.s32.totalorder %s669_s27, %s669_s27 }
  0x1d   :  { %p462_p11 = scmp.ne.s32.totalorder %s669_s27, %s461_s23  ;;  %p467_p13 = scmp.lt.s32.totalorder %s461_s23, %s461_s23 }
  0x1f   :  { %p468_p0 = por %p467_p13, %p466_p12 }
  0x21   :  { %p469_p1 = pnand %p468_p0, %p462_p11 }
  0x23   :  { %472 = shalt.err (!%p469_p1)
}
  0x24   :  { %s617_s1 = smov 64   ;;  %s618_s24 = smov 4  }
  0x25   :  { %60 = dma.hbm_to_vmem [thread:$0]  %s798_s3, 256, %s669_s27, [#allocation10], %s617_s1, %s617_s1, %s618_s24  }
  0x26   :  { %s619_s28 = smov [#allocation12]   ;;  %s620_s30 = smov [#allocation3]  }
  0x27   :  { %s76_s29 = sshll.u32 %s619_s28, 4  ;;  %s22_s8 = sshll.u32 %s620_s30, 4  ;;  %s77_s29 = int_to_ptr.vmem [resolvable:$true] %s76_s29  ;;  %s700_s8 = int_to_ptr.vmem [resolvable:$true] %s22_s8 }
  0x28   :  { %s473_s11 = scalar_lea.hbm %s800_s5, 512 }
  0x29   :  { %p474_p2 = scmp.ne.s32.totalorder %s800_s5, %s473_s11  ;;  %p477_p3 = scmp.lt.u32.totalorder %s473_s11, %s800_s5 }
  0x2b   :  { %p479_p4 = pnand %p477_p3, %p474_p2 }
  0x2d   :  { %482 = shalt.err (!%p479_p4)
}
  0x2e   :  { %s483_s3 = scalar_lea.vmem %s77_s29, 512  ;;  %p488_p6 = scmp.lt.s32.totalorder %s77_s29, %s77_s29 }
  0x2f   :  { %p484_p5 = scmp.ne.s32.totalorder %s77_s29, %s483_s3  ;;  %p489_p7 = scmp.lt.s32.totalorder %s483_s3, %s483_s3 }
  0x31   :  { %p490_p8 = por %p489_p7, %p488_p6 }
  0x33   :  { %p491_p9 = pnand %p490_p8, %p484_p5 }
  0x35   :  { %494 = shalt.err (!%p491_p9)
}
  0x36   :  { %82 = dma.hbm_to_vmem [thread:$0]  %s800_s5, 512, %s77_s29, [#allocation13], %s617_s1, %s617_s1, %s618_s24  }
  0x37   :  { %s495_s19 = scalar_lea.hbm %s795_s0, 256 }
  0x38   :  { %p496_p10 = scmp.ne.s32.totalorder %s795_s0, %s495_s19  ;;  %p499_p11 = scmp.lt.u32.totalorder %s495_s19, %s795_s0 }
  0x3a   :  { %p501_p12 = pnand %p499_p11, %p496_p10 }
  0x3c   :  { %504 = shalt.err (!%p501_p12)
}
  0x3d   :  { %s505_s25 = scalar_lea.vmem %s700_s8, 256  ;;  %p510_p0 = scmp.lt.s32.totalorder %s700_s8, %s700_s8 }
  0x3e   :  { %p506_p13 = scmp.ne.s32.totalorder %s700_s8, %s505_s25  ;;  %p511_p1 = scmp.lt.s32.totalorder %s505_s25, %s505_s25 }
  0x40   :  { %p512_p2 = por %p511_p1, %p510_p0 }
  0x42   :  { %p513_p3 = pnand %p512_p2, %p506_p13 }
  0x44   :  { %516 = shalt.err (!%p513_p3)
}
  0x45   :  { %s621_s5 = smov 128   ;;  %s622_s1 = smov 8  }
  0x46   :  { %28 = dma.hbm_to_vmem [thread:$0]  %s795_s0, 256, %s700_s8, [#allocation4], %s621_s5, %s621_s5, %s622_s1  }
  0x47   :  { %s623_s28 = smov [#allocation8]   ;;  %s624_s30 = smov [#allocation11]  }
  0x48   :  { %s45_s29 = sshll.u32 %s623_s28, 4  ;;  %s67_s9 = sshll.u32 %s624_s30, 4  ;;  %s46_s29 = int_to_ptr.vmem [resolvable:$true] %s45_s29  ;;  %s68_s9 = int_to_ptr.vmem [resolvable:$true] %s67_s9 }
  0x49   :  { %s517_s12 = scalar_lea.hbm %s797_s2, 16 }
  0x4a   :  { %p518_p4 = scmp.ne.s32.totalorder %s797_s2, %s517_s12  ;;  %p521_p5 = scmp.lt.u32.totalorder %s517_s12, %s797_s2 }
  0x4c   :  { %p523_p6 = pnand %p521_p5, %p518_p4 }
  0x4e   :  { %526 = shalt.err (!%p523_p6)
}
  0x4f   :  { %s527_s0 = scalar_lea.vmem %s46_s29, 16  ;;  %s531_s8 = scalar_lea.vmem %s46_s29, 32 }
  0x50   :  { %p528_p7 = scmp.ne.s32.totalorder %s46_s29, %s527_s0  ;;  %p532_p8 = scmp.lt.s32.totalorder %s46_s29, %s46_s29 }
  0x51   :  { %p533_p9 = scmp.lt.s32.totalorder %s531_s8, %s527_s0 }
  0x53   :  { %p534_p10 = por %p533_p9, %p532_p8 }
  0x55   :  { %p535_p11 = pnand %p534_p10, %p528_p7 }
  0x57   :  { %538 = shalt.err (!%p535_p11)
}
  0x58   :  { %48 = dma.hbm_to_vmem [thread:$0]  %s797_s2, 16, %s46_s29, [#allocation7]  }
  0x59   :  { %s539_s19 = scalar_lea.hbm %s799_s4, 16 }
  0x5a   :  { %p540_p12 = scmp.ne.s32.totalorder %s799_s4, %s539_s19  ;;  %p543_p13 = scmp.lt.u32.totalorder %s539_s19, %s799_s4 }
  0x5c   :  { %p545_p0 = pnand %p543_p13, %p540_p12 }
  0x5e   :  { %548 = shalt.err (!%p545_p0)
}
  0x5f   :  { %s549_s25 = scalar_lea.vmem %s68_s9, 16  ;;  %s553_s24 = scalar_lea.vmem %s68_s9, 32 }
  0x60   :  { %p550_p1 = scmp.ne.s32.totalorder %s68_s9, %s549_s25  ;;  %p554_p2 = scmp.lt.s32.totalorder %s68_s9, %s68_s9 }
  0x61   :  { %p555_p3 = scmp.lt.s32.totalorder %s553_s24, %s549_s25 }
  0x63   :  { %p556_p4 = por %p555_p3, %p554_p2 }
  0x65   :  { %p557_p5 = pnand %p556_p4, %p550_p1 }
  0x67   :  { %560 = shalt.err (!%p557_p5)
}
  0x68   :  { %70 = dma.hbm_to_vmem [thread:$0]  %s799_s4, 16, %s68_s9, [#allocation10]  }
  0x69   :  { %s625_s28 = smov [#allocation14]   ;;  %s561_s11 = scalar_lea.hbm %s801_s6, 16 }
  0x6a   :  { %s89_s29 = sshll.u32 %s625_s28, 4  ;;  %p562_p6 = scmp.ne.s32.totalorder %s801_s6, %s561_s11  ;;  %s90_s29 = int_to_ptr.vmem [resolvable:$true] %s89_s29 }
  0x6b   :  { %p565_p7 = scmp.lt.u32.totalorder %s561_s11, %s801_s6 }
  0x6d   :  { %p567_p8 = pnand %p565_p7, %p562_p6 }
  0x6f   :  { %570 = shalt.err (!%p567_p8)
}
  0x70   :  { %s571_s3 = scalar_lea.vmem %s90_s29, 16  ;;  %s575_s4 = scalar_lea.vmem %s90_s29, 32 }
  0x71   :  { %p572_p9 = scmp.ne.s32.totalorder %s90_s29, %s571_s3  ;;  %p576_p10 = scmp.lt.s32.totalorder %s90_s29, %s90_s29 }
  0x72   :  { %p577_p11 = scmp.lt.s32.totalorder %s575_s4, %s571_s3 }
  0x74   :  { %p578_p12 = por %p577_p11, %p576_p10 }
  0x76   :  { %p579_p13 = pnand %p578_p12, %p572_p9 }
  0x78   :  { %582 = shalt.err (!%p579_p13)
}
  0x79   :  { %92 = dma.hbm_to_vmem [thread:$0]  %s801_s6, 16, %s90_s29, [#allocation13]  }
  0x7a   :  { %605 = dma.done.wait [#allocation4], 256  }
  0x7b   :  { %606 = vsyncadd [#allocation4], 4294967040 }
  0x7c   :  { %607 = dma.done.wait [#allocation7], 32  }
  0x7d   :  { %608 = vsyncadd [#allocation7], 4294967264 }
  0x7e   :  { %609 = dma.done.wait [#allocation10], 272  }
  0x7f   :  { %610 = vsyncadd [#allocation10], 4294967024 }
  0x80   :  { %611 = dma.done.wait [#allocation13], 528  }
  0x81   :  { %612 = vsyncadd [#allocation13], 4294966768  ;;  %vm121_vm0 = vcmask 261120   ;;  %v119_v0 = vld [vmem:[#allocation3] sm:$0xff]  ;;  %v120_v1 = vld [vmem:[#allocation3 + $0x8] sm:$0xff]  ;;  %v626_v15 = vmov 0.0  }
  0x82   :  { %v122_v2 = vsel %vm121_vm0, %v119_v0, 0.0  ;;  %v125_v3 = vsel %vm121_vm0, %v120_v1, 0.0  ;;  %v415_v14 = vld [vmem:[#allocation9] sm:$0xff]   ;;  %381 = vmatprep.subr.bf16.mxu0 %v626_v15  ;;  %389 = vmatprep.subr.bf16.mxu1 %v626_v15  ;;  %v416_v16 = vld [vmem:[#allocation9 + $0x8] sm:$0xff]   ;;  %vm627_vm1 = vmmov 0   ;;  %v417_v35 = vld [vmem:[#allocation12] sm:$0xff]  }
  0x83   :  { %123 = vadd.xlane.f32.xlu0 %v122_v2  ;;  %382 = vmatpush3.bf16.msra.mxu0 %v415_v14  ;;  %v361_v25 = vld [vmem:[#allocation6] ss:$0 sm:$0xff]  ;;  %v362_v29 = vld [vmem:[#allocation8] ss:$0 sm:$0xff]  ;;  %v419_v37 = vld [vmem:[#allocation12 + $0x10] sm:$0xff]   ;;  %vm292_vm2 = vcmask 523264  }
  0x84   :  { %385 = vmatprep.mubr.msk.bf16.mxu0 %vm627_vm1, %v626_v15  ;;  %383 = vmatprep.subr.bf16.mxu0 %v626_v15  ;;  %v418_v36 = vld [vmem:[#allocation12 + $0x8] sm:$0xff]   ;;  %v420_v38 = vld [vmem:[#allocation12 + $0x18] sm:$0xff]   ;;  %v363_v39 = vld [vmem:[#allocation14] ss:$0 sm:$0xff]  ;;  %s628_s6 = smov [#allocation15]  }
  0x85   :  { %397 = vmatprep.mubr.msk.bf16.mxu1 %vm627_vm1, %v626_v15  ;;  %390 = vmatpush3.bf16.msra.mxu1 %v417_v35  ;;  %176 = vst.msk [vmem:[#allocation15] sm:$0xff] %vm121_vm0, %v363_v39  ;;  %177 = vst.msk [vmem:[#allocation15 + $0x8] sm:$0xff] %vm121_vm0, %v363_v39  ;;  %v364_v40 = vld [vmem:[#allocation11] ss:$0 sm:$0xff]  ;;  %s346_s8 = sshll.u32 %s628_s6, 4  ;;  %s347_s8 = int_to_ptr.vmem [resolvable:$true] %s346_s8 }
  0x86   :  { %391 = vmatprep.subr.bf16.mxu1 %v626_v15  ;;  %s583_s27 = scalar_lea.vmem %s347_s8, 256  ;;  %p588_p1 = scmp.lt.s32.totalorder %s347_s8, %s347_s8 }
  0x87   :  { %126 = vadd.xlane.f32.xlu0 %v125_v3  ;;  %384 = vmatpush3.bf16.msra.mxu0 %v416_v16  ;;  %p584_p0 = scmp.ne.s32.totalorder %s347_s8, %s583_s27  ;;  %p589_p2 = scmp.lt.s32.totalorder %s583_s27, %s583_s27 }
  0x89   :  { %392 = vmatpush3.bf16.msra.mxu1 %v418_v36  ;;  %p590_p3 = por %p589_p2, %p588_p1 }
  0x8a   :  { %393 = vmatprep.subr.bf16.mxu1 %v626_v15 }
  0x8b   :  { %p591_p4 = pnand %p590_p3, %p584_p0 }
  0x8c   :  { %v257_v58 = vld [vmem:[#allocation15] sm:$0xff]  ;;  %v258_v60 = vld [vmem:[#allocation15 + $0x8] sm:$0xff] }
  0x8d   :  { %394 = vmatpush3.bf16.msra.mxu1 %v419_v37 }
  0x8e   :  { %395 = vmatprep.subr.bf16.mxu1 %v626_v15 }
  0x91   :  { %396 = vmatpush3.bf16.msra.mxu1 %v420_v38 }
 0x110   :  { %v124_v4 = vpop.xlane.xlu0 %123 }
 0x111   :  { %v129_v5 = vmul.f32 0.03125, %v124_v4 }
 0x113   :  { %v131_v6 = vsub.f32 %v119_v0, %v129_v5 }
 0x114   :  { %v127_v7 = vpop.xlane.xlu0 %126 }
 0x115   :  { %v130_v8 = vmul.f32 0.03125, %v127_v7  ;;  %v133_v9 = vmul.f32 %v131_v6, %v131_v6 }
 0x117   :  { %v132_v10 = vsub.f32 %v120_v1, %v130_v8  ;;  %v135_v11 = vsel %vm121_vm0, %v133_v9, 0.0 }
 0x118   :  { %136 = vadd.xlane.f32.xlu1 %v135_v11 }
 0x119   :  { %v134_v12 = vmul.f32 %v132_v10, %v132_v10 }
 0x11b   :  { %v138_v13 = vsel %vm121_vm0, %v134_v12, 0.0 }
 0x11c   :  { %139 = vadd.xlane.f32.xlu1 %v138_v13 }
 0x1a5   :  { %v137_v17 = vpop.xlane.xlu1 %136 }
 0x1a6   :  { %v141_v18 = vmul.f32 0.03125, %v137_v17 }
 0x1a8   :  { %v143_v19 = vadd.f32 1e-05, %v141_v18 }
 0x1a9   :  { %v140_v20 = vpop.xlane.xlu1 %139 }
 0x1aa   :  { %421 = vrsqrt.f32 %v143_v19  ;;  %v142_v21 = vmul.f32 0.03125, %v140_v20 }
 0x1ac   :  { %v144_v22 = vadd.f32 1e-05, %v142_v21 }
 0x1ae   :  { %423 = vrsqrt.f32 %v144_v22 }
 0x1b4   :  { %v422_v23 = vpop.eup %421 }
 0x1b5   :  { %v147_v24 = vmul.f32 %v422_v23, %v131_v6 }
 0x1b7   :  { %v156_v27 = vmul.f32 %v361_v25, %v147_v24 }
 0x1b8   :  { %v424_v26 = vpop.eup %423 }
 0x1b9   :  { %v148_v28 = vmul.f32 %v424_v26, %v132_v10  ;;  %v165_v31 = vadd.f32 %v362_v29, %v156_v27 }
 0x1bb   :  { %v157_v30 = vmul.f32 %v361_v25, %v148_v28 }
 0x1bd   :  { %v166_v32 = vadd.f32 %v362_v29, %v157_v30 }
 0x1bf   :  { %v167_v33 = vpack.c.bf16 %v166_v32, %v165_v31 }
 0x1c1   :  { %168 = vst.msk [vmem:[#allocation2] sm:$0xff] %vm121_vm0, %v167_v33 }
 0x1c8   :  { %v178_v34 = vld [vmem:[#allocation2] sm:$0xff] }
 0x1c9   :  { %386 = vmatmul.mubr.msk.bf16.vlgmr.msra.gmra.mrb[0].mxu0 %vm121_vm0, %v178_v34 }
 0x29c   :  { %v240_v41 = vpop.f32.mrb[0].mxu0 }
 0x29d   :  { %v241_v42 = vadd.f32 %v364_v40, %v240_v41  ;;  %v387_v43 = vpop.f32.mrb[1].mxu0 }
 0x29e   :  { %v243_v44 = vpop.f32.mrb[2].mxu0 }
 0x29f   :  { %v249_v45 = vmul.f32 0.70710677, %v241_v42  ;;  %v244_v46 = vadd.f32 %v364_v40, %v243_v44  ;;  %v388_v47 = vpop.f32.mrb[3].mxu0  ;;  %v247_v52 = vmul.f32 0.5, %v241_v42 }
 0x2a1   :  { %425 = verf.f32 %v249_v45  ;;  %v250_v48 = vmul.f32 0.70710677, %v244_v46  ;;  %v248_v53 = vmul.f32 0.5, %v244_v46 }
 0x2a3   :  { %427 = verf.f32 %v250_v48 }
 0x2ab   :  { %v426_v49 = vpop.eup %425 }
 0x2ac   :  { %v253_v50 = vadd.f32 1.0, %v426_v49 }
 0x2ad   :  { %v428_v51 = vpop.eup %427 }
 0x2ae   :  { %v254_v54 = vadd.f32 1.0, %v428_v51  ;;  %v255_v55 = vmul.f32 %v253_v50, %v247_v52 }
 0x2b0   :  { %v256_v56 = vmul.f32 %v254_v54, %v248_v53 }
 0x2b2   :  { %v259_v57 = vpack.c.bf16 %v256_v56, %v255_v55 }
 0x2b4   :  { %398 = vmatmul.mubr.msk.bf16.vlgmr.msra.gmra.mrb[0].mxu1 %vm292_vm2, %v259_v57 }
 0x387   :  { %v330_v59 = vpop.f32.mrb[0].mxu1 }
 0x388   :  { %v337_v61 = vadd.f32 %v330_v59, %v257_v58  ;;  %v399_v62 = vpop.f32.mrb[1].mxu1 }
 0x389   :  { %v333_v63 = vpop.f32.mrb[2].mxu1 }
 0x38a   :  { %339 = vst.msk [vmem:[#allocation15] sm:$0xff] %vm121_vm0, %v337_v61  ;;  %v338_v0 = vadd.f32 %v333_v63, %v258_v60  ;;  %v400_v1 = vpop.f32.mrb[3].mxu1 }
 0x38c   :  { %340 = vst.msk [vmem:[#allocation15 + $0x8] sm:$0xff] %vm121_vm0, %v338_v0 }
 0x38d   :  { %594 = shalt.err (!%p591_p4)
}
 0x38e   :  { %s595_s18 = scalar_lea.hbm %s802_s7, 256 }
 0x38f   :  { %p596_p5 = scmp.ne.s32.totalorder %s802_s7, %s595_s18  ;;  %p599_p6 = scmp.lt.u32.totalorder %s595_s18, %s802_s7 }
 0x391   :  { %p601_p7 = pnand %p599_p6, %p596_p5 }
 0x393   :  { %604 = shalt.err (!%p601_p7)
}
 0x394   :  { %352 = dma.vmem_to_hbm [thread:$0]  %s347_s8, 256, %s802_s7, [#allocation5], %s621_s5, %s621_s5, %s622_s1  }
 0x395   :  { %613 = dma.done.wait [#allocation5], 256  }
 0x396   :  { %614 = vsyncadd [#allocation5], 4294967040 }
 0x397   :  { %356 = vsyncpa [#allocation4], 1 }
 0x398   :  { %357 = vsyncpa [#allocation7], 1 }
 0x399   :  { %358 = vsyncpa [#allocation10], 1 }
 0x39a   :  { %359 = vsyncpa [#allocation13], 1 }
 0x39b   :  { %360 = vsyncpa [#allocation5], 1 }

</bundles_post_ra>
